<compile_context>
chip_gen: v7x
topology: tpu7x:2x2x1
jax: 0.10.0
libtpu: 0.0.40
codegen_flags: <defaults>
</compile_context>

<pallas_src>
import functools

import jax
import jax.numpy as jnp
import numpy as np
from jax.experimental import pallas as pl
from jax.experimental.pallas import tpu as pltpu


def _round_up(x, m):
    return ((x + m - 1) // m) * m


def _ffn_kernel(x_ref, w1_ref, b1_ref, w2_ref, b2_ref, gamma_ref, beta_ref,
                out_ref, acc_ref, *, ln_eps):
    k = pl.program_id(1)

    @pl.when(k == 0)
    def _():
        acc_ref[...] = jnp.zeros_like(acc_ref)

    # x tile: (tm, E) in the activation dtype (feeds the MXU directly).
    x = x_ref[...]

    # fc1 for this hidden tile: (tm, tk), f32 accumulation on the MXU.
    h = jnp.dot(x, w1_ref[...], preferred_element_type=jnp.float32)
    # Fused bias + ReLU + downcast: only one (tm, tk) intermediate stays live.
    h = jnp.maximum(h + b1_ref[...], 0.0).astype(w2_ref.dtype)

    # fc2 partial product, accumulated in f32 VMEM scratch.
    acc_ref[...] += jnp.dot(h, w2_ref[...], preferred_element_type=jnp.float32)

    @pl.when(k == pl.num_programs(1) - 1)
    def _():
        # dropout(p=0.0) is identity.  Bias + residual + LayerNorm in f32.
        o = acc_ref[...] + b2_ref[...] + x.astype(jnp.float32)
        mean = jnp.mean(o, axis=-1, keepdims=True)
        # One-pass variance: E[o^2] - mean^2 (saves one XLU reduction pass).
        var = jnp.mean(o * o, axis=-1, keepdims=True) - mean * mean
        o = (o - mean) * jax.lax.rsqrt(var + ln_eps)
        o = o * gamma_ref[...] + beta_ref[...]
        out_ref[...] = o.astype(out_ref.dtype)


def prepare_ffn_params(params, dtype):
    """One-time parameter prep (do at setup time, NOT per forward call):
    transpose nn.Linear weights to (in, out) layout and cast them to the
    activation dtype so both MXU operands match.  Biases / LN params stay f32
    (the epilogue math runs in f32)."""
    w1, w2 = params["w1"], params["w2"]
    H, E = w1.shape
    assert w2.shape == (E, H)
    return {
        "w1t": jnp.asarray(w1, dtype).T,                                # (E, H)
        "w2t": jnp.asarray(w2, dtype).T,                                # (H, E)
        "b1": jnp.asarray(params["b1"], jnp.float32).reshape(1, H),
        "b2": jnp.asarray(params["b2"], jnp.float32).reshape(1, E),
        "gamma": jnp.asarray(params["gamma"], jnp.float32).reshape(1, E),
        "beta": jnp.asarray(params["beta"], jnp.float32).reshape(1, E),
    }


def position_wise_feed_forward(x, prepared, *, block_rows=256,
                               hidden_block=None, ln_eps=1e-5):
    """Pallas implementation of PositionWiseFeedForward.forward.

    x: (..., embed_size), same dtype as the prepared weights.
    prepared: output of prepare_ffn_params.
    block_rows: rows (flattened batch*seq) per grid step.  256 is safe on
      v5e/v6e/v7x; 512 is a good choice on v5e/v6e once weights are streamed.
    hidden_block: H-tile size; default 512 for 4-byte weights, 1024 for 2-byte.
    """
    w1t, w2t = prepared["w1t"], prepared["w2t"]
    b1, b2 = prepared["b1"], prepared["b2"]
    gamma, beta = prepared["gamma"], prepared["beta"]

    orig_shape = x.shape
    E, H = w1t.shape
    assert orig_shape[-1] == E

    # Flatten all leading dims into a single rows axis; no host-side padding
    # (Pallas masks the partial last row block).
    xf = x.reshape(-1, E)
    M = xf.shape[0]

    # --- row tile ------------------------------------------------------------
    tm = min(block_rows, _round_up(M, 8))
    if pl.cdiv(M, tm) < 2 and M > 8:
        # Give v7x's two TensorCores at least two "parallel" row blocks.
        tm = _round_up(pl.cdiv(M, 2), 8)
    n_row_blocks = pl.cdiv(M, tm)

    # --- hidden (reduction) tile: must divide H, prefer multiples of 128 -----
    w_bytes = jnp.dtype(w1t.dtype).itemsize
    tk_max = hidden_block if hidden_block is not None else (1024 if w_bytes <= 2 else 512)
    if H <= tk_max:
        tk = H
    else:
        tk = 0
        cand = (tk_max // 128) * 128
        while cand >= 128:
            if H % cand == 0:
                tk = cand
                break
            cand -= 128
        if tk == 0:
            # TODO(synk): mask partial hidden blocks instead of full-H fallback.
            tk = H
    n_k_blocks = H // tk

    grid = (n_row_blocks, n_k_blocks)

    # --- VMEM budget (tile footprint, double-buffered where Pallas does) -----
    x_bytes = jnp.dtype(xf.dtype).itemsize
    footprint = (
        2 * tm * E * x_bytes          # x row tile
        + 2 * E * tk * w_bytes        # W1^T block
        + 2 * tk * E * w_bytes        # W2^T block
        + 2 * tm * E * x_bytes        # output tile
        + tm * E * 4                  # f32 accumulator scratch
        + 2 * (tk + 3 * E) * 4        # b1 tile, b2, gamma, beta
    )
    vmem_limit = int(min(max(32 * 1024 * 1024, 2 * footprint), 64 * 1024 * 1024))

    cost = pl.CostEstimate(
        flops=4 * M * E * H,                 # two matmuls
        transcendentals=M,                   # one rsqrt per row
        bytes_accessed=int(
            xf.size * x_bytes + M * E * x_bytes
            + n_row_blocks * (w1t.size + w2t.size) * w_bytes
            + (b1.size + b2.size + gamma.size + beta.size) * 4),
    )

    kernel = functools.partial(_ffn_kernel, ln_eps=float(ln_eps))

    out = pl.pallas_call(
        kernel,
        grid=grid,
        in_specs=[
            pl.BlockSpec((tm, E), lambda i, k: (i, 0)),    # x rows tile
            pl.BlockSpec((E, tk), lambda i, k: (0, k)),    # W1^T hidden block
            pl.BlockSpec((1, tk), lambda i, k: (0, k)),    # b1 hidden block
            pl.BlockSpec((tk, E), lambda i, k: (k, 0)),    # W2^T hidden block
            pl.BlockSpec((1, E), lambda i, k: (0, 0)),     # b2
            pl.BlockSpec((1, E), lambda i, k: (0, 0)),     # gamma
            pl.BlockSpec((1, E), lambda i, k: (0, 0)),     # beta
        ],
        out_specs=pl.BlockSpec((tm, E), lambda i, k: (i, 0)),
        out_shape=jax.ShapeDtypeStruct((M, E), x.dtype),
        scratch_shapes=[pltpu.VMEM((tm, E), jnp.float32)],
        compiler_params=pltpu.CompilerParams(
            dimension_semantics=("parallel", "arbitrary"),
            vmem_limit_bytes=vmem_limit),
        cost_estimate=cost,
    )(xf, w1t, b1, w2t, b2, gamma, beta)

    return out.reshape(orig_shape)


def _reference(x, params, ln_eps=1e-5):
    """Pure-JAX reference matching the PyTorch forward (dropout p=0)."""
    w1, b1, w2, b2, gamma, beta = (
        params["w1"], params["b1"], params["w2"], params["b2"],
        params["gamma"], params["beta"])
    out = jnp.maximum(x @ w1.T + b1, 0.0)
    out = out @ w2.T + b2
    out = out + x
    mean = jnp.mean(out, axis=-1, keepdims=True)
    var = jnp.mean((out - mean) ** 2, axis=-1, keepdims=True)
    out = (out - mean) / jnp.sqrt(var + ln_eps)
    return out * gamma + beta


if __name__ == "__main__":
    # Small shapes: batch=2, seq=8, embed_size=32, hidden=64.
    N, S, E, H = 2, 8, 32, 64
    key = jax.random.PRNGKey(0)
    ks = jax.random.split(key, 6)

    # Deterministic synthetic parameters (nn.Linear-style shapes / init scale).
    s1 = 1.0 / np.sqrt(E)
    s2 = 1.0 / np.sqrt(H)
    params = {
        "w1": jax.random.uniform(ks[0], (H, E), jnp.float32, -s1, s1),
        "b1": jax.random.uniform(ks[1], (H,), jnp.float32, -s1, s1),
        "w2": jax.random.uniform(ks[2], (E, H), jnp.float32, -s2, s2),
        "b2": jax.random.uniform(ks[3], (E,), jnp.float32, -s2, s2),
        "gamma": jnp.ones((E,), jnp.float32),
        "beta": jnp.zeros((E,), jnp.float32),
    }

    x = jax.random.normal(ks[4], (N, S, E), jnp.float32)

    # One-time weight prep (transpose + dtype cast), not per forward call.
    prepared = prepare_ffn_params(params, x.dtype)

    out = jax.block_until_ready(position_wise_feed_forward(x, prepared))
    ref = _reference(x, params)
    np.testing.assert_allclose(np.asarray(out), np.asarray(ref),
                               rtol=1e-5, atol=1e-5)

    # Partial last row block (M % tm != 0) to exercise the masked writeback.
    x2 = jax.random.normal(ks[5], (3, 5, E), jnp.float32)
    out2 = jax.block_until_ready(position_wise_feed_forward(x2, prepared))
    ref2 = _reference(x2, params)
    np.testing.assert_allclose(np.asarray(out2), np.asarray(ref2),
                               rtol=1e-5, atol=1e-5)

    print("KERNEL_OK")
</pallas_src>

<mosaic_0001>
module attributes {stable_mosaic.version = 11 : i64} {
  func.func @_ffn_kernel(%arg0: i32, %arg1: i32, %arg2: memref<8x32xf32, #tpu.memory_space<vmem>>, %arg3: memref<32x64xf32, #tpu.memory_space<vmem>>, %arg4: memref<1x64xf32, #tpu.memory_space<vmem>>, %arg5: memref<64x32xf32, #tpu.memory_space<vmem>>, %arg6: memref<1x32xf32, #tpu.memory_space<vmem>>, %arg7: memref<1x32xf32, #tpu.memory_space<vmem>>, %arg8: memref<1x32xf32, #tpu.memory_space<vmem>>, %arg9: memref<8x32xf32, #tpu.memory_space<vmem>>, %arg10: memref<8x32xf32, #tpu.memory_space<vmem>>) attributes {dimension_semantics = [#tpu.dimension_semantics<parallel>, #tpu.dimension_semantics<arbitrary>], iteration_bounds = array<i64: 2, 1>, scalar_prefetch = 0 : i64, scratch_operands = 1 : i64, tpu.core_type = #tpu.core_type<tc>, window_params = [{transform_indices = @transform_0, window_bounds = array<i64: 8, 32>}, {transform_indices = @transform_1, window_bounds = array<i64: 32, 64>}, {transform_indices = @transform_2, window_bounds = array<i64: 1, 64>}, {transform_indices = @transform_3, window_bounds = array<i64: 64, 32>}, {pipeline_mode = #tpu.pipeline_mode<synchronous>, transform_indices = @transform_4, window_bounds = array<i64: 1, 32>}, {pipeline_mode = #tpu.pipeline_mode<synchronous>, transform_indices = @transform_5, window_bounds = array<i64: 1, 32>}, {pipeline_mode = #tpu.pipeline_mode<synchronous>, transform_indices = @transform_6, window_bounds = array<i64: 1, 32>}, {transform_indices = @transform_7, window_bounds = array<i64: 8, 32>}]} {
    %c0_i32 = arith.constant 0 : i32
    %0 = arith.cmpi eq, %arg1, %c0_i32 : i32
    %1 = arith.extui %0 : i1 to i32
    %c0_i32_0 = arith.constant 0 : i32
    %2 = arith.cmpi ne, %1, %c0_i32_0 : i32
    scf.if %2 {
      %cst_16 = arith.constant 0.000000e+00 : f32
      %19 = vector.broadcast %cst_16 : f32 to vector<8x32xf32>
      %c0_17 = arith.constant 0 : index
      %c0_18 = arith.constant 0 : index
      %20 = vector.load %arg10[%c0_17, %c0_18] : memref<8x32xf32, #tpu.memory_space<vmem>>, vector<8x32xf32>
      tpu.vector_store %arg10[%c0_17, %c0_18], %19 {strides = array<i32>} : memref<8x32xf32, #tpu.memory_space<vmem>>, vector<8x32xf32>,
    } else {
    }
    %c0 = arith.constant 0 : index
    %c0_1 = arith.constant 0 : index
    %3 = vector.load %arg2[%c0, %c0_1] : memref<8x32xf32, #tpu.memory_space<vmem>>, vector<8x32xf32>
    %c0_2 = arith.constant 0 : index
    %c0_3 = arith.constant 0 : index
    %4 = vector.load %arg3[%c0_2, %c0_3] : memref<32x64xf32, #tpu.memory_space<vmem>>, vector<32x64xf32>
    %cst = arith.constant dense<0.000000e+00> : vector<8x64xf32>
    %5 = tpu.matmul %3, %4, %cst {dimension_numbers = #tpu.dot_dimension_numbers<[1], [0], [0], [1], [0, 0, 1, 1], [], []>} : vector<8x32xf32>, vector<32x64xf32>, vector<8x64xf32> -> vector<8x64xf32>
    %c0_4 = arith.constant 0 : index
    %c0_5 = arith.constant 0 : index
    %6 = vector.load %arg4[%c0_4, %c0_5] : memref<1x64xf32, #tpu.memory_space<vmem>>, vector<1x64xf32>
    %7 = vector.broadcast %6 : vector<1x64xf32> to vector<8x64xf32>
    %8 = arith.addf %5, %7 : vector<8x64xf32>
    %cst_6 = arith.constant 0.000000e+00 : f32
    %9 = vector.broadcast %cst_6 : f32 to vector<8x64xf32>
    %10 = arith.maximumf %8, %9 : vector<8x64xf32>
    %c0_7 = arith.constant 0 : index
    %c0_8 = arith.constant 0 : index
    %11 = vector.load %arg10[%c0_7, %c0_8] : memref<8x32xf32, #tpu.memory_space<vmem>>, vector<8x32xf32>
    %c0_9 = arith.constant 0 : index
    %c0_10 = arith.constant 0 : index
    %12 = vector.load %arg5[%c0_9, %c0_10] : memref<64x32xf32, #tpu.memory_space<vmem>>, vector<64x32xf32>
    %cst_11 = arith.constant dense<0.000000e+00> : vector<8x32xf32>
    %13 = tpu.matmul %10, %12, %cst_11 {dimension_numbers = #tpu.dot_dimension_numbers<[1], [0], [0], [1], [0, 0, 1, 1], [], []>} : vector<8x64xf32>, vector<64x32xf32>, vector<8x32xf32> -> vector<8x32xf32>
    %14 = arith.addf %11, %13 : vector<8x32xf32>
    %c0_12 = arith.constant 0 : index
    %c0_13 = arith.constant 0 : index
    %15 = vector.load %arg10[%c0_12, %c0_13] : memref<8x32xf32, #tpu.memory_space<vmem>>, vector<8x32xf32>
    tpu.vector_store %arg10[%c0_12, %c0_13], %14 {strides = array<i32>} : memref<8x32xf32, #tpu.memory_space<vmem>>, vector<8x32xf32>,
    %c0_i32_14 = arith.constant 0 : i32
    %16 = arith.cmpi eq, %arg1, %c0_i32_14 : i32
    %17 = arith.extui %16 : i1 to i32
    %c0_i32_15 = arith.constant 0 : i32
    %18 = arith.cmpi ne, %17, %c0_i32_15 : i32
    scf.if %18 {
      %c0_16 = arith.constant 0 : index
      %c0_17 = arith.constant 0 : index
      %19 = vector.load %arg10[%c0_16, %c0_17] : memref<8x32xf32, #tpu.memory_space<vmem>>, vector<8x32xf32>
      %c0_18 = arith.constant 0 : index
      %c0_19 = arith.constant 0 : index
      %20 = vector.load %arg6[%c0_18, %c0_19] : memref<1x32xf32, #tpu.memory_space<vmem>>, vector<1x32xf32>
      %21 = vector.broadcast %20 : vector<1x32xf32> to vector<8x32xf32>
      %22 = arith.addf %19, %21 : vector<8x32xf32>
      %23 = arith.addf %22, %3 : vector<8x32xf32>
      %cst_20 = arith.constant dense<0.000000e+00> : vector<8xf32>
      %24 = vector.multi_reduction <add>, %23, %cst_20 [1] : vector<8x32xf32> to vector<8xf32>
      %25 = vector.shape_cast %24 : vector<8xf32> to vector<8x1xf32>
      %cst_21 = arith.constant 3.200000e+01 : f32
      %26 = vector.broadcast %cst_21 : f32 to vector<8x1xf32>
      %27 = arith.divf %25, %26 : vector<8x1xf32>
      %28 = arith.mulf %23, %23 : vector<8x32xf32>
      %cst_22 = arith.constant dense<0.000000e+00> : vector<8xf32>
      %29 = vector.multi_reduction <add>, %28, %cst_22 [1] : vector<8x32xf32> to vector<8xf32>
      %30 = vector.shape_cast %29 : vector<8xf32> to vector<8x1xf32>
      %cst_23 = arith.constant 3.200000e+01 : f32
      %31 = vector.broadcast %cst_23 : f32 to vector<8x1xf32>
      %32 = arith.divf %30, %31 : vector<8x1xf32>
      %33 = arith.mulf %27, %27 : vector<8x1xf32>
      %34 = arith.subf %32, %33 : vector<8x1xf32>
      %35 = vector.broadcast %27 : vector<8x1xf32> to vector<8x32xf32>
      %36 = arith.subf %23, %35 : vector<8x32xf32>
      %cst_24 = arith.constant 9.99999974E-6 : f32
      %37 = vector.broadcast %cst_24 : f32 to vector<8x1xf32>
      %38 = arith.addf %34, %37 : vector<8x1xf32>
      %39 = math.rsqrt %38 : vector<8x1xf32>
      %40 = vector.broadcast %39 : vector<8x1xf32> to vector<8x32xf32>
      %41 = arith.mulf %36, %40 : vector<8x32xf32>
      %c0_25 = arith.constant 0 : index
      %c0_26 = arith.constant 0 : index
      %42 = vector.load %arg7[%c0_25, %c0_26] : memref<1x32xf32, #tpu.memory_space<vmem>>, vector<1x32xf32>
      %43 = vector.broadcast %42 : vector<1x32xf32> to vector<8x32xf32>
      %44 = arith.mulf %41, %43 : vector<8x32xf32>
      %c0_27 = arith.constant 0 : index
      %c0_28 = arith.constant 0 : index
      %45 = vector.load %arg8[%c0_27, %c0_28] : memref<1x32xf32, #tpu.memory_space<vmem>>, vector<1x32xf32>
      %46 = vector.broadcast %45 : vector<1x32xf32> to vector<8x32xf32>
      %47 = arith.addf %44, %46 : vector<8x32xf32>
      %c0_29 = arith.constant 0 : index
      %c0_30 = arith.constant 0 : index
      %48 = vector.load %arg9[%c0_29, %c0_30] : memref<8x32xf32, #tpu.memory_space<vmem>>, vector<8x32xf32>
      tpu.vector_store %arg9[%c0_29, %c0_30], %47 {strides = array<i32>} : memref<8x32xf32, #tpu.memory_space<vmem>>, vector<8x32xf32>,
    } else {
    }
    return
  }
  func.func @transform_0(%arg0: i32, %arg1: i32) -> (i32, i32) {
    %c0_i32 = arith.constant 0 : i32
    %c0_i32_0 = arith.constant 0 : i32
    return %arg0, %c0_i32 : i32, i32
  }
  func.func @transform_1(%arg0: i32, %arg1: i32) -> (i32, i32) {
    %c0_i32 = arith.constant 0 : i32
    %c0_i32_0 = arith.constant 0 : i32
    return %c0_i32, %arg1 : i32, i32
  }
  func.func @transform_2(%arg0: i32, %arg1: i32) -> (i32, i32) {
    %c0_i32 = arith.constant 0 : i32
    %c0_i32_0 = arith.constant 0 : i32
    return %c0_i32, %arg1 : i32, i32
  }
  func.func @transform_3(%arg0: i32, %arg1: i32) -> (i32, i32) {
    %c0_i32 = arith.constant 0 : i32
    %c0_i32_0 = arith.constant 0 : i32
    return %arg1, %c0_i32 : i32, i32
  }
  func.func @transform_4(%arg0: i32, %arg1: i32) -> (i32, i32) {
    %c0_i32 = arith.constant 0 : i32
    %c0_i32_0 = arith.constant 0 : i32
    %c0_i32_1 = arith.constant 0 : i32
    return %c0_i32, %c0_i32_0 : i32, i32
  }
  func.func @transform_5(%arg0: i32, %arg1: i32) -> (i32, i32) {
    %c0_i32 = arith.constant 0 : i32
    %c0_i32_0 = arith.constant 0 : i32
    %c0_i32_1 = arith.constant 0 : i32
    return %c0_i32, %c0_i32_0 : i32, i32
  }
  func.func @transform_6(%arg0: i32, %arg1: i32) -> (i32, i32) {
    %c0_i32 = arith.constant 0 : i32
    %c0_i32_0 = arith.constant 0 : i32
    %c0_i32_1 = arith.constant 0 : i32
    return %c0_i32, %c0_i32_0 : i32, i32
  }
  func.func @transform_7(%arg0: i32, %arg1: i32) -> (i32, i32) {
    %c0_i32 = arith.constant 0 : i32
    %c0_i32_0 = arith.constant 0 : i32
    return %arg0, %c0_i32 : i32, i32
  }
}

</mosaic_0001>

<bundles_post_ra>
// kernel: tpu_custom_call.1
= control target key start
LH: loop header
LB: loop body
LE: loop exit
PB: predicated region body
PF: predicated region fallthrough
CT: control target
= control target key end

     0   :  { %12 = vsyncpa [#allocation4], 0  ;;  %s1118_s0 = inlined_call_operand.vmem [shape: f32[16,32], index: 0, kind: input, shape index: {}]   ;;  %s1119_s1 = inlined_call_operand.vmem [shape: f32[32,64], index: 1, kind: input, shape index: {}]   ;;  %s1120_s2 = inlined_call_operand.vmem [shape: f32[1,64], index: 2, kind: input, shape index: {}]   ;;  %s1121_s3 = inlined_call_operand.vmem [shape: f32[64,32], index: 3, kind: input, shape index: {}]   ;;  %s1122_s4 = inlined_call_operand.vmem [shape: f32[1,32], index: 4, kind: input, shape index: {}]   ;;  %s1123_s5 = inlined_call_operand.vmem [shape: f32[1,32], index: 5, kind: input, shape index: {}]   ;;  %s1124_s6 = inlined_call_operand.vmem [shape: f32[1,32], index: 6, kind: input, shape index: {}]   ;;  %s1125_s7 = inlined_call_operand.hbm [shape: f32[16,32], index: 7, kind: output, shape index: {}]  }
   0x1   :  { %14 = vsyncpa [#allocation4 + $0x1], 0  ;;  %s952_s24 = smov 0   ;;  %s954_s25 = smov 0  }
   0x2   :  { %s956_s26 = smov 0   ;;  %s958_s27 = smov 0  }
   0x3   :  { %s960_s28 = smov 0   ;;  %s962_s29 = smov 0  }
   0x4 LB: > { %s686_s30 = sadd.s32 4294967295, %s906_s29   ;;  %s687_s8 = sadd.s32 4294967294, %s906_s29   ;;  %s906_s29 = sphi %s962_s29, %s20_s29   ;;  %s902_s28 = sphi %s960_s28, %s1132_s28   ;;  %s898_s27 = sphi %s958_s27, %s1131_s27   ;;  %s894_s26 = sphi %s956_s26, %s1130_s26   ;;  %s890_s25 = sphi %s954_s25, %s1129_s25   ;;  %s886_s24 = sphi %s952_s24, %s1128_s24  }
   0x5   : > { %s32_s9 = sadd.s32 1, %s902_s28  ;;  %s206_s10 = sadd.s32 1, %s894_s26 }
   0x6   : > { %p34_p0 = scmp.ge.s32.totalorder %s32_s9, 2  ;;  %p216_p1 = scmp.ne.s32.totalorder %s894_s26, %s890_s25 }
   0x7   : > { %p217_p2 = scmp.eq.s32.totalorder %s686_s30, 1  ;;  %p222_p3 = scmp.ne.s32.totalorder %s890_s25, %s886_s24 }
   0x8   : > { %s1134_s9 = smov (%p34_p0, %s32_s9), 0  ;;  %p223_p5 = scmp.eq.s32.totalorder %s687_s8, 1 }
   0x9   : > { %p992_p4 = por %p217_p2, %p216_p1  ;;  %s203_s12 = ssub.s32 %s902_s28, %s1134_s9 }
   0xa   : > { %p693_p6 = scmp.ge.s32.totalorder %s906_s29, 1  ;;  %p204_p7 = scmp.eq.s32.totalorder %s203_s12, 0 }
   0xb   : > { %p999_p8 = por %p223_p5, %p222_p3  ;;  %p279_p9 = scmp.lt.s32.totalorder %s906_s29, 3 }
   0xc   : > { %s1005_s14 = scalar_select %p204_p7, %s894_s26, %s206_s10  }
   0xd   : > { %p280_p10 = pnand %p693_p6, %p279_p9 }
   0xe   : > { %v346_v0 = vld [vmem:[%s1119_s1] sm:$0xff] (!%p280_p10)  ;;  %v347_v1 = vld [vmem:[%s1119_s1 + $0x8] sm:$0xff] (!%p280_p10)  ;;  %v348_v2 = vld [vmem:[%s1119_s1 + $0x10] sm:$0xff] (!%p280_p10)  ;;  %vm343_vm0 = vcmask (!%p280_p10), 261120   ;;  %v908_v3 = vmov (!%p280_p10), 0.0|0.0   ;;  %v909_v6 = vmov (!%p280_p10), 0.0  }
   0xf   : > { %283 = sbr.rel (%p280_p10) target bundleno = 653 (0x28d), region = 48  ;;  %750 = vmatprep.subr.bf16.mxu0 (!%p280_p10), %v908_v3  ;;  %v751_v4 = vpack.c.bf16 (!%p280_p10), %v347_v1, %v346_v0  ;;  %v349_v5 = vld [vmem:[%s1119_s1 + $0x18] sm:$0xff] (!%p280_p10)  ;;  %344 = vst.msk [vmem:[#allocation2] sm:$0xff] (!%p280_p10), %vm343_vm0, %v909_v6  ;;  %p322_p11 = scmp.lt.s32.totalorder (!%p280_p10), %s898_s27, 1  ;;  %756 = vmatprep.subr.bf16.mxu1 (!%p280_p10), %v908_v3  ;;  %v433_v7 = vld [vmem:[%s1121_s3] sm:$0xff] (!%p280_p10)  ;;  %v434_v8 = vld [vmem:[%s1121_s3 + $0x8] sm:$0xff] (!%p280_p10) }
  0x10   : > { %vm910_vm1 = vmmov (!%p280_p10), 0   ;;  %v757_v9 = vpack.c.bf16 (!%p280_p10), %v434_v8, %v433_v7  ;;  %v435_v10 = vld [vmem:[%s1121_s3 + $0x10] sm:$0xff] (!%p280_p10)  ;;  %v436_v11 = vld [vmem:[%s1121_s3 + $0x18] sm:$0xff] (!%p280_p10)  ;;  %v754_v12 = vpack.c.bf16 (!%p280_p10), %v349_v5, %v348_v2  ;;  %v437_v14 = vld [vmem:[%s1121_s3 + $0x20] sm:$0xff] (!%p280_p10)  ;;  %vm441_vm2 = vcmask (!%p280_p10), 523264   ;;  %s319_s22 = sand.u32 (!%p280_p10), 1, %s890_s25  }
  0x11   : > { %728 = vmatprep.mubr.msk.f32.mxu0 (!%p280_p10), %vm910_vm1, %v909_v6  ;;  %747 = vmatprep.mubr.msk.f32.mxu1 (!%p280_p10), %vm910_vm1, %v909_v6  ;;  %v760_v13 = vpack.c.bf16 (!%p280_p10), %v436_v11, %v435_v10  ;;  %v438_v15 = vld [vmem:[%s1121_s3 + $0x28] sm:$0xff] (!%p280_p10)  ;;  %v439_v18 = vld [vmem:[%s1121_s3 + $0x30] sm:$0xff] (!%p280_p10)  ;;  %v440_v19 = vld [vmem:[%s1121_s3 + $0x38] sm:$0xff] (!%p280_p10)  ;;  %s694_s23 = sshll.u32 (!%p280_p10), %s319_s22, 3  ;;  %s703_s15 = sshll.u32 (!%p280_p10), %s898_s27, 7 }
  0x12   : > { %752 = vmatpush3.bf16.msra.mxu0 (!%p280_p10), %v751_v4  ;;  %758 = vmatpush3.bf16.msra.mxu1 (!%p280_p10), %v757_v9  ;;  %v763_v17 = vpack.c.bf16 (!%p280_p10), %v438_v15, %v437_v14  ;;  %v766_v20 = vpack.c.bf16 (!%p280_p10), %v440_v19, %v439_v18  ;;  %v696_v21 = vld [vmem:[%s1120_s2] ss:$0 sm:$0xff] (!%p280_p10)  ;;  %s321_s16 = scalar_lea.vmem (!%p280_p10), [#allocation3], %s694_s23  ;;  %s1070_s20 = scalar_lea.hbm (!%p280_p10), %s1125_s7, %s703_s15 }
  0x13   : > { %753 = vmatprep.subr.bf16.mxu0 (!%p280_p10), %v908_v3  ;;  %759 = vmatprep.subr.bf16.mxu1 (!%p280_p10), %v908_v3  ;;  %v699_v30 = vld [vmem:[%s1122_s4] ss:$0 sm:$0xff] (!%p280_p10)  ;;  %s577_s17 = sshll.u32 (!%p280_p10), %s321_s16, 4  ;;  %s564_s21 = scalar_lea.sflag (!%p280_p10), [#allocation4], %s319_s22  ;;  %s1072_s17 = int_to_ptr.vmem [resolvable:$true] %s577_s17 }
  0x14   : > { %v700_v46 = vld [vmem:[%s1123_s5] ss:$0 sm:$0xff] (!%p280_p10)  ;;  %s828_s30 = scalar_lea.vmem (!%p280_p10), %s1072_s17, 128 }
  0x15   : > { %v701_v48 = vld [vmem:[%s1124_s6] ss:$0 sm:$0xff] (!%p280_p10)  ;;  %p829_p12 = scmp.ne.s32.totalorder (!%p280_p10), %s1072_s17, %s828_s30 }
  0x16   : > { %s323_s18 = scalar_select %p322_p11, %s898_s27, 1  ;;  %755 = vmatpush3.bf16.msra.mxu0 %v754_v12  ;;  %761 = vmatpush3.bf16.msra.mxu1 %v760_v13  ;;  %v432_v26 = vld [vmem:[#allocation2] sm:$0xff] }
  0x17   : > { %762 = vmatprep.subr.bf16.mxu1 %v908_v3  ;;  %p830_p13 = pnand %p829_p12, %p992_p4  ;;  %s911_s27 = smov [#allocation3]  }
  0x18   : > { %s695_s19 = sshll.u32 %s323_s18, 3  ;;  %s832_s23 = sshll.u32 %s911_s27, 4  ;;  %s833_s23 = int_to_ptr.vmem [resolvable:$false] %s832_s23 }
  0x19   : > { %s325_s10 = scalar_lea.vmem %s1118_s0, %s695_s19  ;;  %p831_p0 = pneg %p830_p13 }
  0x1a   : > { %v345_v16 = vld [vmem:[%s325_s10] sm:$0xff]  ;;  %764 = vmatpush3.bf16.msra.mxu1 %v763_v17  ;;  %s834_s8 = scalar_lea.vmem %s833_s23, 256  ;;  %p835_p1 = scmp.lt.s32.totalorder %s1072_s17, %s833_s23 }
  0x1b   : > { %729 = vmatmul.mubr.msk.f32.vlgmr.msra.gmra.mrb[0].mxu0 %vm343_vm0, %v345_v16  ;;  %765 = vmatprep.subr.bf16.mxu1 %v908_v3  ;;  %p836_p2 = scmp.lt.s32.totalorder %s834_s8, %s828_s30 }
  0x1d   : > { %p837_p3 = por %p836_p2, %p835_p1 }
  0x1e   : > { %767 = vmatpush3.bf16.msra.mxu1 %v766_v20 }
  0x1f   : > { %p838_p5 = pnand %p837_p3, %p831_p0 }
  0xee   : > { %v427_v22 = vpop.f32.mrb[0].mxu0 }
  0xef   : > { %v428_v23 = vadd.f32 %v696_v21, %v427_v22  ;;  %v730_v24 = vpop.f32.mrb[1].mxu0 }
  0xf1   : > { %v431_v25 = vmax.f32 %v428_v23, 0.0 }
  0xf3   : > { %748 = vmatmul.mubr.msk.f32.vlgmr.msra.gmra.mrb[0].mxu1 %vm441_vm2, %v431_v25 }
 0x1c6   : > { %v511_v27 = vpop.f32.mrb[0].mxu1 }
 0x1c7   : > { %v515_v28 = vadd.f32 %v511_v27, %v432_v26  ;;  %v749_v29 = vpop.f32.mrb[1].mxu1 }
 0x1c9   : > { %516 = vst.msk [vmem:[#allocation2] sm:$0xff] %vm343_vm0, %v515_v28 }
 0x1d0   : > { %v520_v31 = vld [vmem:[#allocation2] sm:$0xff] }
 0x1d1   : > { %v528_v32 = vadd.f32 %v699_v30, %v520_v31 }
 0x1d3   : > { %v529_v33 = vadd.f32 %v528_v32, %v345_v16 }
 0x1d5   : > { %v530_v34 = vsel %vm343_vm0, %v529_v33, 0.0  ;;  %v535_v35 = vmul.f32 %v529_v33, %v529_v33 }
 0x1d6   : > { %531 = vadd.xlane.f32.xlu0 %v530_v34 }
 0x1d7   : > { %v536_v36 = vsel %vm343_vm0, %v535_v35, 0.0 }
 0x1da   : > { %537 = vadd.xlane.f32.xlu0 %v536_v36 }
 0x263   : > { %v532_v37 = vpop.xlane.xlu0 %531 }
 0x264   : > { %v534_v38 = vmul.f32 0.03125, %v532_v37 }
 0x266   : > { %v540_v40 = vmul.f32 %v534_v38, %v534_v38  ;;  %v542_v44 = vsub.f32 %v529_v33, %v534_v38 }
 0x267   : > { %v538_v39 = vpop.xlane.xlu0 %537 }
 0x268   : > { %v539_v41 = vmul.f32 0.03125, %v538_v39 }
 0x26a   : > { %v541_v42 = vsub.f32 %v539_v41, %v540_v40 }
 0x26c   : > { %v543_v43 = vadd.f32 1e-05, %v541_v42 }
 0x26e   : > { %826 = vrsqrt.f32 %v543_v43 }
 0x278   : > { %v827_v45 = vpop.eup %826 }
 0x279   : > { %v545_v47 = vmul.f32 %v827_v45, %v542_v44 }
 0x27b   : > { %v553_v49 = vmul.f32 %v700_v46, %v545_v47 }
 0x27d   : > { %v561_v50 = vadd.f32 %v701_v48, %v553_v49 }
 0x27f   : > { %562 = vst.msk [vmem:[%s321_s16] sm:$0xff] %vm343_vm0, %v561_v50 }
 0x280   : > { %841 = shalt.err (!%p838_p5)
}
 0x281   : > { %s842_s22 = scalar_lea.hbm %s1070_s20, 128  ;;  %s846_s15 = scalar_lea.hbm %s1125_s7, 256 }
 0x282   : > { %p843_p6 = scmp.ne.s32.totalorder %s1070_s20, %s842_s22  ;;  %p847_p10 = scmp.lt.u32.totalorder %s1070_s20, %s1125_s7 }
 0x283   : > { %p848_p11 = scmp.lt.u32.totalorder %s846_s15, %s842_s22  ;;  %p850_p13 = scmp.lt.u32.totalorder %s842_s22, %s1070_s20 }
 0x284   : > { %p844_p7 = pnand %p843_p6, %p992_p4 }
 0x285   : > { %p849_p12 = por %p848_p11, %p847_p10 }
 0x286   : > { %p845_p9 = pneg %p844_p7 }
 0x287   : > { %p851_p0 = por %p850_p13, %p849_p12 }
 0x289   : > { %p852_p1 = pnand %p851_p0, %p845_p9 }
 0x28b   : > { %855 = shalt.err (!%p852_p1)
}
 0x28c   : > { %768 = dma.vmem_to_hbm [thread:$0]  (%p992_p4), %s1072_s17, 128, %s1070_s20, %s564_s21  }
 0x28d PF: > { %p774_p2 = scmp.ge.s32.totalorder %s906_s29, 2  ;;  %s589_s19 = sand.u32 1, %s886_s24  }
 0x28e   : > { %s590_s30 = scalar_lea.sflag [#allocation4], %s589_s19 }
 0x28f   : > { %p771_p3 = pnand %p774_p2, %p999_p8 }
 0x291   : > { %881 = dma.done.wait (!%p771_p3), %s590_s30, 128  }
 0x292   : > { %883 = vsyncadd (!%p771_p3), %s590_s30, 4294967168  ;;  %s20_s29 = sadd.s32 1, %s906_s29   ;;  %s1128_s24 = smov %s890_s25 }
 0x293   : > { %p17_p5 = scmp.ge.s32.totalorder %s20_s29, 4   ;;  %s1129_s25 = smov %s894_s26 }
 0x294   : > { %s1130_s26 = smov %s1005_s14  ;;  %s1131_s27 = smov %s902_s28 }
 0x295   : > { %s1132_s28 = smov %s1134_s9  ;;  %19 = sbr.rel (!%p17_p5) target bundleno = 4 (0x4), region = 100 }
 0x29c   :  { %595 = vsyncpa [#allocation4], 1 }
 0x29d   :  { %597 = vsyncpa [#allocation4 + $0x1], 1 }

</bundles_post_ra>
